<compile_context>
chip_gen: v6e
topology: v6e:2x2x1
jax: 0.10.0
libtpu: 0.0.40
codegen_flags: <defaults>
</compile_context>

<pallas_src>
import functools

import jax
import jax.numpy as jnp
from jax import lax
from jax.experimental import pallas as pl
from jax.experimental.pallas import tpu as pltpu

_NEG_PAD = -1e30     # finite "minus infinity" for padded vocab entries
_ROW = 16            # row-tile alignment (safe for bf16 sublane packing)


def _round_up(x, m):
    return ((x + m - 1) // m) * m


def _cdiv(a, b):
    return -(-a // b)


def _vmem_limit_bytes():
    """Generation-aware scoped-VMEM limit (75% of physical, 48 MiB fallback)."""
    try:
        cap = getattr(pltpu.get_tpu_info(), "vmem_capacity_bytes", 0)
        if cap:
            return min(int(cap * 3 // 4), 112 * 1024 * 1024)
    except Exception:  # pragma: no cover - conservative fallback
        pass
    return 48 * 1024 * 1024


def _est_vmem_bytes(bm, bv, dp, cd_isz, out_isz):
    """Rough per-pass VMEM footprint for the chosen tiles (double-buffered)."""
    b = 2 * bm * dp * cd_isz        # x tile (double-buffered)
    b += 2 * bv * dp * cd_isz       # W tile (double-buffered)
    b += 2 * bv * 4                 # bias tile
    b += 2 * bm * bv * out_isz      # logits output block (double-buffered)
    b += bm * bv * 4                # f32 logits intermediate
    b += 4 * bm * 4                 # lse output + m/l scratch
    return b


def _proj_lse_kernel(x_ref, w_ref, b_ref, logits_ref, lse_ref, m_sc, l_sc):
    """Pass 1: logits tile -> output buffer + online logsumexp over V tiles.

    Grid = (m_tiles, v_tiles); V (reduction) axis is innermost / "arbitrary".
    """
    j = pl.program_id(1)

    @pl.when(j == 0)
    def _():
        m_sc[...] = jnp.full_like(m_sc, -jnp.inf)
        l_sc[...] = jnp.zeros_like(l_sc)

    # (bm, Dp) x (bv, Dp) contracted on Dp -> (bm, bv); f32 accumulation.
    logits = lax.dot_general(
        x_ref[...], w_ref[...],
        dimension_numbers=(((1,), (1,)), ((), ())),
        preferred_element_type=jnp.float32,
    ) + b_ref[...]

    # Cache the raw logits; pass 2 subtracts lse in place (no re-matmul).
    logits_ref[...] = logits.astype(logits_ref.dtype)

    m_prev = m_sc[...]
    m_new = jnp.maximum(m_prev, jnp.max(logits, axis=-1, keepdims=True))
    alpha = jnp.exp(m_prev - m_new)
    l_sc[...] = alpha * l_sc[...] + jnp.sum(
        jnp.exp(logits - m_new), axis=-1, keepdims=True)
    m_sc[...] = m_new

    @pl.when(j == pl.num_programs(1) - 1)
    def _():
        lse_ref[...] = m_sc[...] + jnp.log(l_sc[...])


def _normalize_kernel(logits_ref, lse_ref, o_ref):
    """Pass 2: pure elementwise logits - lse, written back in place."""
    o_ref[...] = (logits_ref[...].astype(jnp.float32)
                  - lse_ref[...]).astype(o_ref.dtype)


@functools.partial(
    jax.jit,
    static_argnames=("block_m", "block_v", "compute_dtype", "out_dtype"))
def projection_layer(x, weight, bias, *, block_m=768, block_v=1024,
                     compute_dtype=jnp.bfloat16, out_dtype=jnp.bfloat16):
    """x: (B, S, D); weight: (V, D) (PyTorch layout); bias: (V,).

    Returns (B, S, V) log-probabilities in `out_dtype`.
    """
    B, S, D = x.shape
    V = weight.shape[0]
    M = B * S

    cd_isz = jnp.dtype(compute_dtype).itemsize
    out_isz = jnp.dtype(out_dtype).itemsize

    m_al = _round_up(M, _ROW)
    v_al = _round_up(V, 128)
    Dp = _round_up(D, 128)          # pad contraction axis for full MXU lanes

    vmem_limit = _vmem_limit_bytes()
    budget = int(vmem_limit * 0.8)

    # Roofline-friendly defaults, clamped to the problem, then shrunk
    # (bv first) until the estimated footprint fits the VMEM budget.
    bm = min(_round_up(block_m, _ROW), m_al)
    bv = min(_round_up(block_v, 128), v_al)
    while _est_vmem_bytes(bm, bv, Dp, cd_isz, out_isz) > budget and bv > 256:
        bv = max(256, (bv // 2) // 128 * 128)
    while _est_vmem_bytes(bm, bv, Dp, cd_isz, out_isz) > budget and bm > 256:
        bm = max(256, (bm // 2) // _ROW * _ROW)

    # Balance tiles across the padded extents; force >= 2 M tiles when M
    # allows it so v7x's second TensorCore gets work on the "parallel" axis.
    nm = _cdiv(m_al, bm)
    if nm < 2 and m_al >= 2 * _ROW:
        nm = 2
    bm = _round_up(_cdiv(m_al, nm), _ROW)
    nv = _cdiv(v_al, bv)
    bv = _round_up(_cdiv(v_al, nv), 128)
    Mp, Vp = bm * nm, bv * nv

    x2d = x.reshape(M, D).astype(compute_dtype)
    w = weight.astype(compute_dtype)     # (V, D): PyTorch layout, no transpose
    b2d = bias.astype(jnp.float32).reshape(1, V)

    if Mp != M or Dp != D:
        x2d = jnp.pad(x2d, ((0, Mp - M), (0, Dp - D)))
    if Vp != V or Dp != D:
        w = jnp.pad(w, ((0, Vp - V), (0, Dp - D)))
    if Vp != V:
        b2d = jnp.pad(b2d, ((0, 0), (0, Vp - V)), constant_values=_NEG_PAD)

    x_spec = pl.BlockSpec((bm, Dp), lambda i, j: (i, 0))
    w_spec = pl.BlockSpec((bv, Dp), lambda i, j: (j, 0))
    b_spec = pl.BlockSpec((1, bv), lambda i, j: (0, j))
    logits_spec = pl.BlockSpec((bm, bv), lambda i, j: (i, j))
    lse_spec = pl.BlockSpec((bm, 1), lambda i, j: (i, 0))

    matmul_flops = 2 * Mp * Dp * Vp
    # x block depends only on i -> fetched once per M tile (Mp*Dp total);
    # W / bias blocks change every inner step -> re-streamed nm times.
    pass1_bytes = (Mp * Dp * cd_isz
                   + nm * Vp * Dp * cd_isz
                   + nm * Vp * 4
                   + Mp * Vp * out_isz
                   + Mp * 4)

    # ---- Pass 1: logits into the output buffer + per-row logsumexp ----
    logits, lse = pl.pallas_call(
        _proj_lse_kernel,
        out_shape=(jax.ShapeDtypeStruct((Mp, Vp), out_dtype),
                   jax.ShapeDtypeStruct((Mp, 1), jnp.float32)),
        grid_spec=pltpu.PrefetchScalarGridSpec(
            num_scalar_prefetch=0,
            grid=(nm, nv),
            in_specs=[x_spec, w_spec, b_spec],
            out_specs=[logits_spec, lse_spec],
            scratch_shapes=[pltpu.VMEM((bm, 1), jnp.float32),
                            pltpu.VMEM((bm, 1), jnp.float32)],
        ),
        compiler_params=pltpu.CompilerParams(
            dimension_semantics=("parallel", "arbitrary"),
            vmem_limit_bytes=vmem_limit,
        ),
        cost_estimate=pl.CostEstimate(
            flops=matmul_flops,
            transcendentals=Mp * Vp,
            bytes_accessed=pass1_bytes,
        ),
    )(x2d, w, b2d)

    # ---- Pass 2: in-place normalize (logits - lse), no matmul ----
    out = pl.pallas_call(
        _normalize_kernel,
        out_shape=jax.ShapeDtypeStruct((Mp, Vp), out_dtype),
        grid_spec=pltpu.PrefetchScalarGridSpec(
            num_scalar_prefetch=0,
            grid=(nm, nv),
            in_specs=[logits_spec, lse_spec],
            out_specs=logits_spec,
        ),
        input_output_aliases={0: 0},     # update the logits buffer in place
        compiler_params=pltpu.CompilerParams(
            dimension_semantics=("parallel", "parallel"),
            vmem_limit_bytes=vmem_limit,
        ),
        cost_estimate=pl.CostEstimate(
            flops=Mp * Vp,
            transcendentals=0,
            bytes_accessed=2 * Mp * Vp * out_isz + nv * Mp * 4,
        ),
    )(logits, lse)

    return out[:M, :V].reshape(B, S, V)


def init_params(key, d_model, voc_size):
    # Deterministic init mimicking nn.Linear defaults (uniform +- 1/sqrt(d_model)).
    kw, kb = jax.random.split(key)
    bound = 1.0 / (d_model ** 0.5)
    weight = jax.random.uniform(kw, (voc_size, d_model), jnp.float32, -bound, bound)
    bias = jax.random.uniform(kb, (voc_size,), jnp.float32, -bound, bound)
    return weight, bias


if __name__ == "__main__":
    key = jax.random.PRNGKey(0)
    k_x, k_p = jax.random.split(key)

    # Small shapes: D and V deliberately NOT multiples of 128 (exercises the
    # contraction-axis and vocab padding paths), block_v=128 forces multiple V
    # tiles (exercises the online logsumexp), and M=48 is large enough that
    # the M axis is split into >= 2 tiles (v7x dual-TC path).
    B, S, D, V = 2, 24, 48, 272
    x = jax.random.normal(k_x, (B, S, D), jnp.float32)
    weight, bias = init_params(k_p, D, V)

    # Reference with matched bf16-matmul / f32-accumulate precision.
    ref_logits = jnp.dot(
        x.reshape(-1, D).astype(jnp.bfloat16),
        weight.astype(jnp.bfloat16).T,
        preferred_element_type=jnp.float32,
    ) + bias
    ref = jax.nn.log_softmax(ref_logits, axis=-1).reshape(B, S, V)

    # f32-output path: logits cached & normalized in f32 -> tight tolerance.
    out32 = projection_layer(x, weight, bias, block_v=128, out_dtype=jnp.float32)
    jax.block_until_ready(out32)
    assert out32.shape == (B, S, V)
    err32 = jnp.max(jnp.abs(out32 - ref))
    assert err32 < 2e-3, f"f32 path max abs err {err32}"

    # Default bf16-output path: logits cached in bf16 -> looser tolerance.
    out16 = projection_layer(x, weight, bias, block_v=128)
    jax.block_until_ready(out16)
    assert out16.shape == (B, S, V)
    assert out16.dtype == jnp.bfloat16
    err16 = jnp.max(jnp.abs(out16.astype(jnp.float32) - ref))
    assert err16 < 5e-2, f"bf16 path max abs err {err16}"

    print("KERNEL_OK")
</pallas_src>

<mosaic_0001>
module attributes {stable_mosaic.version = 11 : i64} {
  func.func @_normalize_kernel(%arg0: i32, %arg1: i32, %arg2: memref<32x128xf32, #tpu.memory_space<vmem>>, %arg3: memref<32x1xf32, #tpu.memory_space<vmem>>, %arg4: memref<32x128xf32, #tpu.memory_space<vmem>>) attributes {dimension_semantics = [#tpu.dimension_semantics<parallel>, #tpu.dimension_semantics<parallel>], iteration_bounds = array<i64: 2, 3>, scalar_prefetch = 0 : i64, scratch_operands = 0 : i64, tpu.core_type = #tpu.core_type<tc>, window_params = [{transform_indices = @transform_0, window_bounds = array<i64: 32, 128>}, {transform_indices = @transform_1, window_bounds = array<i64: 32, 1>}, {transform_indices = @transform_2, window_bounds = array<i64: 32, 128>}]} {
    %c0 = arith.constant 0 : index
    %c0_0 = arith.constant 0 : index
    %0 = vector.load %arg2[%c0, %c0_0] : memref<32x128xf32, #tpu.memory_space<vmem>>, vector<32x128xf32>
    %c0_1 = arith.constant 0 : index
    %c0_2 = arith.constant 0 : index
    %1 = vector.load %arg3[%c0_1, %c0_2] : memref<32x1xf32, #tpu.memory_space<vmem>>, vector<32x1xf32>
    %2 = vector.broadcast %1 : vector<32x1xf32> to vector<32x128xf32>
    %3 = arith.subf %0, %2 : vector<32x128xf32>
    %c0_3 = arith.constant 0 : index
    %c0_4 = arith.constant 0 : index
    %4 = vector.load %arg4[%c0_3, %c0_4] : memref<32x128xf32, #tpu.memory_space<vmem>>, vector<32x128xf32>
    tpu.vector_store %arg4[%c0_3, %c0_4], %3 {strides = array<i32>} : memref<32x128xf32, #tpu.memory_space<vmem>>, vector<32x128xf32>,
    return
  }
  func.func @transform_0(%arg0: i32, %arg1: i32) -> (i32, i32) {
    %c0_i32 = arith.constant 0 : i32
    return %arg0, %arg1 : i32, i32
  }
  func.func @transform_1(%arg0: i32, %arg1: i32) -> (i32, i32) {
    %c0_i32 = arith.constant 0 : i32
    %c0_i32_0 = arith.constant 0 : i32
    return %arg0, %c0_i32 : i32, i32
  }
  func.func @transform_2(%arg0: i32, %arg1: i32) -> (i32, i32) {
    %c0_i32 = arith.constant 0 : i32
    return %arg0, %arg1 : i32, i32
  }
}

module attributes {stable_mosaic.version = 11 : i64} {
  func.func @_proj_lse_kernel(%arg0: i32, %arg1: i32, %arg2: memref<32x128xbf16, #tpu.memory_space<vmem>>, %arg3: memref<128x128xbf16, #tpu.memory_space<vmem>>, %arg4: memref<1x128xf32, #tpu.memory_space<vmem>>, %arg5: memref<32x128xf32, #tpu.memory_space<vmem>>, %arg6: memref<32x1xf32, #tpu.memory_space<vmem>>, %arg7: memref<32x1xf32, #tpu.memory_space<vmem>>, %arg8: memref<32x1xf32, #tpu.memory_space<vmem>>) attributes {dimension_semantics = [#tpu.dimension_semantics<parallel>, #tpu.dimension_semantics<arbitrary>], iteration_bounds = array<i64: 2, 3>, scalar_prefetch = 0 : i64, scratch_operands = 2 : i64, tpu.core_type = #tpu.core_type<tc>, window_params = [{transform_indices = @transform_0, window_bounds = array<i64: 32, 128>}, {transform_indices = @transform_1, window_bounds = array<i64: 128, 128>}, {transform_indices = @transform_2, window_bounds = array<i64: 1, 128>}, {transform_indices = @transform_3, window_bounds = array<i64: 32, 128>}, {transform_indices = @transform_4, window_bounds = array<i64: 32, 1>}]} {
    %c0_i32 = arith.constant 0 : i32
    %0 = arith.cmpi eq, %arg1, %c0_i32 : i32
    %1 = arith.extui %0 : i1 to i32
    %c0_i32_0 = arith.constant 0 : i32
    %2 = arith.cmpi ne, %1, %c0_i32_0 : i32
    scf.if %2 {
      %cst_19 = arith.constant 0xFF800000 : f32
      %29 = vector.broadcast %cst_19 : f32 to vector<32x1xf32>
      %c0_20 = arith.constant 0 : index
      %c0_21 = arith.constant 0 : index
      %30 = vector.load %arg7[%c0_20, %c0_21] : memref<32x1xf32, #tpu.memory_space<vmem>>, vector<32x1xf32>
      tpu.vector_store %arg7[%c0_20, %c0_21], %29 {strides = array<i32>} : memref<32x1xf32, #tpu.memory_space<vmem>>, vector<32x1xf32>,
      %cst_22 = arith.constant 0.000000e+00 : f32
      %31 = vector.broadcast %cst_22 : f32 to vector<32x1xf32>
      %c0_23 = arith.constant 0 : index
      %c0_24 = arith.constant 0 : index
      %32 = vector.load %arg8[%c0_23, %c0_24] : memref<32x1xf32, #tpu.memory_space<vmem>>, vector<32x1xf32>
      tpu.vector_store %arg8[%c0_23, %c0_24], %31 {strides = array<i32>} : memref<32x1xf32, #tpu.memory_space<vmem>>, vector<32x1xf32>,
    } else {
    }
    %c0 = arith.constant 0 : index
    %c0_1 = arith.constant 0 : index
    %3 = vector.load %arg2[%c0, %c0_1] : memref<32x128xbf16, #tpu.memory_space<vmem>>, vector<32x128xbf16>
    %c0_2 = arith.constant 0 : index
    %c0_3 = arith.constant 0 : index
    %4 = vector.load %arg3[%c0_2, %c0_3] : memref<128x128xbf16, #tpu.memory_space<vmem>>, vector<128x128xbf16>
    %cst = arith.constant dense<0.000000e+00> : vector<32x128xf32>
    %5 = tpu.matmul %3, %4, %cst {dimension_numbers = #tpu.dot_dimension_numbers<[1], [1], [0], [0], [0, 0, 1, 0], [], []>} : vector<32x128xbf16>, vector<128x128xbf16>, vector<32x128xf32> -> vector<32x128xf32>
    %c0_4 = arith.constant 0 : index
    %c0_5 = arith.constant 0 : index
    %6 = vector.load %arg4[%c0_4, %c0_5] : memref<1x128xf32, #tpu.memory_space<vmem>>, vector<1x128xf32>
    %7 = vector.broadcast %6 : vector<1x128xf32> to vector<32x128xf32>
    %8 = arith.addf %5, %7 : vector<32x128xf32>
    %c0_6 = arith.constant 0 : index
    %c0_7 = arith.constant 0 : index
    %9 = vector.load %arg5[%c0_6, %c0_7] : memref<32x128xf32, #tpu.memory_space<vmem>>, vector<32x128xf32>
    tpu.vector_store %arg5[%c0_6, %c0_7], %8 {strides = array<i32>} : memref<32x128xf32, #tpu.memory_space<vmem>>, vector<32x128xf32>,
    %c0_8 = arith.constant 0 : index
    %c0_9 = arith.constant 0 : index
    %10 = vector.load %arg7[%c0_8, %c0_9] : memref<32x1xf32, #tpu.memory_space<vmem>>, vector<32x1xf32>
    %cst_10 = arith.constant dense<0xFF800000> : vector<32xf32>
    %11 = vector.multi_reduction <maximumf>, %8, %cst_10 [1] : vector<32x128xf32> to vector<32xf32>
    %12 = vector.shape_cast %11 : vector<32xf32> to vector<32x1xf32>
    %13 = arith.maximumf %10, %12 : vector<32x1xf32>
    %14 = arith.subf %10, %13 : vector<32x1xf32>
    %15 = math.exp %14 : vector<32x1xf32>
    %c0_11 = arith.constant 0 : index
    %c0_12 = arith.constant 0 : index
    %16 = vector.load %arg8[%c0_11, %c0_12] : memref<32x1xf32, #tpu.memory_space<vmem>>, vector<32x1xf32>
    %17 = arith.mulf %15, %16 : vector<32x1xf32>
    %18 = vector.broadcast %13 : vector<32x1xf32> to vector<32x128xf32>
    %19 = arith.subf %8, %18 : vector<32x128xf32>
    %20 = math.exp %19 : vector<32x128xf32>
    %cst_13 = arith.constant dense<0.000000e+00> : vector<32xf32>
    %21 = vector.multi_reduction <add>, %20, %cst_13 [1] : vector<32x128xf32> to vector<32xf32>
    %22 = vector.shape_cast %21 : vector<32xf32> to vector<32x1xf32>
    %23 = arith.addf %17, %22 : vector<32x1xf32>
    %c0_14 = arith.constant 0 : index
    %c0_15 = arith.constant 0 : index
    %24 = vector.load %arg8[%c0_14, %c0_15] : memref<32x1xf32, #tpu.memory_space<vmem>>, vector<32x1xf32>
    tpu.vector_store %arg8[%c0_14, %c0_15], %23 {strides = array<i32>} : memref<32x1xf32, #tpu.memory_space<vmem>>, vector<32x1xf32>,
    %c0_16 = arith.constant 0 : index
    %c0_17 = arith.constant 0 : index
    %25 = vector.load %arg7[%c0_16, %c0_17] : memref<32x1xf32, #tpu.memory_space<vmem>>, vector<32x1xf32>
    tpu.vector_store %arg7[%c0_16, %c0_17], %13 {strides = array<i32>} : memref<32x1xf32, #tpu.memory_space<vmem>>, vector<32x1xf32>,
    %c2_i32 = arith.constant 2 : i32
    %26 = arith.cmpi eq, %arg1, %c2_i32 : i32
    %27 = arith.extui %26 : i1 to i32
    %c0_i32_18 = arith.constant 0 : i32
    %28 = arith.cmpi ne, %27, %c0_i32_18 : i32
    scf.if %28 {
      %c0_19 = arith.constant 0 : index
      %c0_20 = arith.constant 0 : index
      %29 = vector.load %arg7[%c0_19, %c0_20] : memref<32x1xf32, #tpu.memory_space<vmem>>, vector<32x1xf32>
      %c0_21 = arith.constant 0 : index
      %c0_22 = arith.constant 0 : index
      %30 = vector.load %arg8[%c0_21, %c0_22] : memref<32x1xf32, #tpu.memory_space<vmem>>, vector<32x1xf32>
      %31 = math.log %30 : vector<32x1xf32>
      %32 = arith.addf %29, %31 : vector<32x1xf32>
      %c0_23 = arith.constant 0 : index
      %c0_24 = arith.constant 0 : index
      %33 = vector.load %arg6[%c0_23, %c0_24] : memref<32x1xf32, #tpu.memory_space<vmem>>, vector<32x1xf32>
      tpu.vector_store %arg6[%c0_23, %c0_24], %32 {strides = array<i32>} : memref<32x1xf32, #tpu.memory_space<vmem>>, vector<32x1xf32>,
    } else {
    }
    return
  }
  func.func @transform_0(%arg0: i32, %arg1: i32) -> (i32, i32) {
    %c0_i32 = arith.constant 0 : i32
    %c0_i32_0 = arith.constant 0 : i32
    return %arg0, %c0_i32 : i32, i32
  }
  func.func @transform_1(%arg0: i32, %arg1: i32) -> (i32, i32) {
    %c0_i32 = arith.constant 0 : i32
    %c0_i32_0 = arith.constant 0 : i32
    return %arg1, %c0_i32 : i32, i32
  }
  func.func @transform_2(%arg0: i32, %arg1: i32) -> (i32, i32) {
    %c0_i32 = arith.constant 0 : i32
    %c0_i32_0 = arith.constant 0 : i32
    return %c0_i32, %arg1 : i32, i32
  }
  func.func @transform_3(%arg0: i32, %arg1: i32) -> (i32, i32) {
    %c0_i32 = arith.constant 0 : i32
    return %arg0, %arg1 : i32, i32
  }
  func.func @transform_4(%arg0: i32, %arg1: i32) -> (i32, i32) {
    %c0_i32 = arith.constant 0 : i32
    %c0_i32_0 = arith.constant 0 : i32
    return %arg0, %c0_i32 : i32, i32
  }
}

</mosaic_0001>

<bundles_post_ra>
// kernel: projection_layer.3
= control target key start
LH: loop header
LB: loop body
LE: loop exit
PB: predicated region body
PF: predicated region fallthrough
CT: control target
= control target key end

     0   :  { %s557_s9 = smov 0   ;;  %s559_s10 = smov 0   ;;  %s657_s0 = inlined_call_operand.vmem [shape: f32[64,384], index: 0, kind: input, shape index: {}, may-alias: {0,2}]   ;;  %s658_s1 = inlined_call_operand.vmem [shape: f32[64,1], index: 1, kind: input, shape index: {}]   ;;  %s659_s2 = inlined_call_operand.vmem [shape: f32[64,384], index: 2, kind: output, shape index: {}, may-alias: {0,2}]  }
   0x1   :  { %s561_s11 = smov 0   ;;  %s563_s12 = smov 0  }
   0x2   :  { %s565_s13 = smov 0   ;;  %s567_s14 = smov 0  }
   0x3   :  { %s569_s15 = smov 0  }
   0x4 LB: > { %s21_s16 = sadd.s32 1, %s531_s13  ;;  %s24_s17 = sadd.s32 1, %s535_s14  ;;  %s539_s15 = sphi %s569_s15, %s12_s15   ;;  %s535_s14 = sphi %s567_s14, %s666_s14   ;;  %s531_s13 = sphi %s565_s13, %s665_s13   ;;  %s527_s12 = sphi %s563_s12, %s664_s12   ;;  %s523_s11 = sphi %s561_s11, %s663_s11   ;;  %s519_s10 = sphi %s559_s10, %s662_s10   ;;  %s515_s9 = sphi %s557_s9, %s661_s9  }
   0x5   : > { %p22_p0 = scmp.ge.s32.totalorder %s21_s16, 3  ;;  %s405_s18 = sadd.s32 4294967295, %s539_s15  }
   0x6   : > { %p40_p1 = scmp.ne.s32.totalorder %s519_s10, %s515_s9  ;;  %p41_p2 = scmp.eq.s32.totalorder %s539_s15, 0 }
   0x7   : > { %s668_s16 = smov (%p22_p0, %s21_s16), 0  ;;  %s670_s17 = smov (!%p22_p0, %s24_s17), %s535_s14 }
   0x8   : > { %p26_p3 = scmp.ge.s32.totalorder %s670_s17, 2  ;;  %p98_p4 = scmp.eq.s32.totalorder %s405_s18, 5 }
   0x9   : > { %s29_s19 = ssub.s32 %s531_s13, %s668_s16  ;;  %p42_p5 = por %p41_p2, %p40_p1 }
   0xa   : > { %s672_s17 = smov (%p26_p3, %s670_s17), 0  ;;  %p605_p6 = por %p98_p4, %p40_p1 }
   0xb   : > { %s28_s21 = ssub.s32 %s535_s14, %s672_s17  ;;  %s33_s23 = sadd.s32 1, %s519_s10 }
   0xc   : > { %s30_s22 = sor.u32 %s29_s19, %s28_s21  ;;  %p408_p8 = scmp.ge.s32.totalorder %s539_s15, 6 }
   0xd   : > { %p31_p7 = scmp.eq.s32.totalorder %s30_s22, 0 }
   0xe   : > { %120 = sbr.rel (%p408_p8) target bundleno = 28 (0x1c), region = 16 }
   0xf   : > { %s613_s24 = scalar_select %p31_p7, %s519_s10, %s33_s23  }
  0x13   : > { %123 = sbr.rel (!%p42_p5) target bundleno = 28 (0x1c), region = 20  ;;  %s125_s25 = sand.u32 (%p42_p5), 1, %s519_s10  }
  0x14   : > { %s424_s26 = smul.u32 (%p42_p5), 12, %s535_s14  ;;  %s409_s27 = sshll.u32 (%p42_p5), %s125_s25, 5 }
  0x15   : > { %s127_s5 = scalar_lea.vmem (%p42_p5), [#allocation2], %s409_s27 }
  0x16   : > { %s130_s28 = sadd.s32 (%p42_p5), %s531_s13, %s424_s26 }
  0x17   : > { %s412_s29 = sshll.u32 (%p42_p5), %s130_s28, 3 }
  0x18   : > { %s132_s4 = scalar_lea.vmem %s657_s0, %s412_s29 }
  0x19   : > { %v167_v0 = vld [vmem:[%s132_s4] sm:$0xff]  ;;  %v169_v1 = vld [vmem:[%s132_s4 + $0x18] sm:$0xff]  ;;  %v171_v2 = vld [vmem:[%s132_s4 + $0x30] sm:$0xff] }
  0x1a   : > { %168 = vst [vmem:[%s127_s5] sm:$0xff] %v167_v0  ;;  %170 = vst [vmem:[%s127_s5 + $0x8] sm:$0xff] %v169_v1  ;;  %v173_v3 = vld [vmem:[%s132_s4 + $0x48] sm:$0xff] }
  0x1b   : > { %172 = vst [vmem:[%s127_s5 + $0x10] sm:$0xff] %v171_v2  ;;  %174 = vst [vmem:[%s127_s5 + $0x18] sm:$0xff] %v173_v3 }
  0x1c PF: > { %p413_p9 = scmp.ge.s32.totalorder %s539_s15, 1  ;;  %p188_p10 = scmp.lt.s32.totalorder %s539_s15, 7 }
  0x1e   : > { %p189_p11 = pnand %p413_p9, %p188_p10 }
  0x1f   : > { %s416_s6 = sshll.u32 (!%p189_p11), %s527_s12, 2  ;;  %s195_s21 = sand.u32 (!%p189_p11), 1, %s515_s9  }
  0x20   : > { %192 = sbr.rel (%p189_p11) target bundleno = 180 (0xb4), region = 62  ;;  %p222_p12 = scmp.lt.s32.totalorder (!%p189_p11), %s416_s6, 7 }
  0x21   : > { %s414_s22 = sshll.u32 (!%p189_p11), %s195_s21, 5 }
  0x22   : > { %s197_s23 = scalar_lea.vmem (!%p189_p11), [#allocation2], %s414_s22  ;;  %s219_s25 = scalar_lea.vmem (!%p189_p11), [#allocation3], %s414_s22 }
  0x25   : > { %v541_v4 = vmov 0   ;;  %s674_s6 = smov (!%p222_p12, %s416_s6), 7  ;;  %v230_v9 = vld [vmem:[%s197_s23 + $0x10] sm:$0xff]  ;;  %v228_v10 = vld [vmem:[%s197_s23] sm:$0xff]  ;;  %v231_v15 = vld [vmem:[%s197_s23 + $0x18] sm:$0xff]  ;;  %s425_s9 = smul.u32 (%p605_p6), 12, %s527_s12 }
  0x26   : > { %484 = vset.pattern.permute.xlu1 %v541_v4  ;;  %483 = vset.pattern.permute.xlu0 %v541_v4  ;;  %s417_s7 = sshll.u32 %s674_s6, 3  ;;  %v229_v16 = vld [vmem:[%s197_s23 + $0x8] sm:$0xff] }
  0x27   : > { %s225_s19 = scalar_lea.vmem %s658_s1, %s417_s7  ;;  %s273_s26 = sadd.s32 (%p605_p6), %s523_s11, %s425_s9 }
  0x28   : > { %v234_v5 = vld [vmem:[%s225_s19 + $0x10] sm:$0xff]  ;;  %v232_v6 = vld [vmem:[%s225_s19] sm:$0xff]  ;;  %v235_v7 = vld [vmem:[%s225_s19 + $0x18] sm:$0xff]  ;;  %s421_s27 = sshll.u32 (%p605_p6), %s273_s26, 3 }
  0x29   : > { %248 = vperm.xlu1 %484, %v234_v5   ;;  %238 = vperm.xlu0 %483, %v232_v6   ;;  %v233_v8 = vld [vmem:[%s225_s19 + $0x8] sm:$0xff]  ;;  %s275_s30 = scalar_lea.vmem (%p605_p6), %s659_s2, %s421_s27 }
  0x2d   : > { %253 = vperm.xlu1 %484, %v235_v7   ;;  %243 = vperm.xlu0 %483, %v233_v8  }
  0xa4   : > { %v249_v11 = vpop.permute.xlu1 %248  ;;  %v239_v12 = vpop.permute.xlu0 %238 }
  0xa5   : > { %v258_v13 = vsub.f32 %v230_v9, %v249_v11  ;;  %v256_v14 = vsub.f32 %v228_v10, %v239_v12 }
  0xa7   : > { %262 = vst [vmem:[%s219_s25 + $0x10] sm:$0xff] %v258_v13  ;;  %260 = vst [vmem:[%s219_s25] sm:$0xff] %v256_v14  ;;  %270 = sbr.rel (!%p605_p6) target bundleno = 180 (0xb4), region = 70 }
  0xa8   : > { %v254_v17 = vpop.permute.xlu1 %253  ;;  %v244_v18 = vpop.permute.xlu0 %243 }
  0xa9   : > { %v259_v19 = vsub.f32 %v231_v15, %v254_v17  ;;  %v257_v20 = vsub.f32 %v229_v16, %v244_v18 }
  0xab   : > { %263 = vst [vmem:[%s219_s25 + $0x18] sm:$0xff] %v259_v19  ;;  %261 = vst [vmem:[%s219_s25 + $0x8] sm:$0xff] %v257_v20 }
  0xae   : > { %v310_v21 = vld [vmem:[%s219_s25] sm:$0xff]  ;;  %v314_v23 = vld [vmem:[%s219_s25 + $0x10] sm:$0xff] }
  0xaf   : > { %311 = vst [vmem:[%s275_s30] sm:$0xff] %v310_v21  ;;  %315 = vst [vmem:[%s275_s30 + $0x30] sm:$0xff] %v314_v23 }
  0xb2   : > { %v312_v22 = vld [vmem:[%s219_s25 + $0x8] sm:$0xff]  ;;  %v316_v24 = vld [vmem:[%s219_s25 + $0x18] sm:$0xff] }
  0xb3   : > { %313 = vst [vmem:[%s275_s30 + $0x18] sm:$0xff] %v312_v22  ;;  %317 = vst [vmem:[%s275_s30 + $0x48] sm:$0xff] %v316_v24 }
  0xb4 PF: > { %s12_s15 = sadd.s32 1, %s539_s15   ;;  %s661_s9 = smov %s519_s10 }
  0xb5   : > { %p9_p13 = scmp.ge.s32.totalorder %s12_s15, 8   ;;  %s662_s10 = smov %s613_s24 }
  0xb6   : > { %s663_s11 = smov %s531_s13  ;;  %s664_s12 = smov %s535_s14 }
  0xb7   : > { %s665_s13 = smov %s668_s16  ;;  %s666_s14 = smov %s672_s17 }
  0xb8   :  { %11 = sbr.rel (!%p9_p13) target bundleno = 4 (0x4), region = 142 }

// kernel: projection_layer.2
= control target key start
LH: loop header
LB: loop body
LE: loop exit
PB: predicated region body
PF: predicated region fallthrough
CT: control target
= control target key end

     0   :  { %s947_s15 = smov 0   ;;  %s949_s16 = smov 0   ;;  %s1103_s0 = inlined_call_operand.vmem [shape: bf16[64,128], index: 0, kind: input, shape index: {}]   ;;  %s1104_s1 = inlined_call_operand.vmem [shape: bf16[384,128], index: 1, kind: input, shape index: {}]   ;;  %s1105_s2 = inlined_call_operand.vmem [shape: f32[1,384], index: 2, kind: input, shape index: {}]   ;;  %s1106_s3 = inlined_call_operand.vmem [shape: f32[64,384], index: 3, kind: output, shape index: {0}]   ;;  %s1107_s4 = inlined_call_operand.vmem [shape: f32[64,1], index: 4, kind: output, shape index: {1}]  }
   0x1   :  { %s951_s17 = smov 0   ;;  %s953_s18 = smov 0  }
   0x2   :  { %s955_s19 = smov 0   ;;  %s957_s20 = smov 0  }
   0x3   :  { %s959_s21 = smov 0  }
   0x4 LB: > { %s24_s22 = sadd.s32 1, %s909_s19  ;;  %s27_s23 = sadd.s32 1, %s913_s20  ;;  %s917_s21 = sphi %s959_s21, %s15_s21   ;;  %s913_s20 = sphi %s957_s20, %s1117_s20   ;;  %s909_s19 = sphi %s955_s19, %s1116_s19   ;;  %s905_s18 = sphi %s953_s18, %s1115_s18   ;;  %s901_s17 = sphi %s951_s17, %s1114_s17   ;;  %s897_s16 = sphi %s949_s16, %s1113_s16   ;;  %s893_s15 = sphi %s947_s15, %s1112_s15  }
   0x5   : > { %p25_p0 = scmp.ge.s32.totalorder %s24_s22, 3  ;;  %s706_s24 = sadd.s32 4294967295, %s917_s21  }
   0x6   : > { %p124_p1 = scmp.ne.s32.totalorder %s897_s16, %s893_s15  ;;  %p125_p2 = scmp.eq.s32.totalorder %s706_s24, 5 }
   0x7   : > { %s1119_s22 = smov (%p25_p0, %s24_s22), 0  ;;  %s1121_s23 = smov (!%p25_p0, %s27_s23), %s913_s20 }
   0x8   : > { %s110_s25 = ssub.s32 %s909_s19, %s1119_s22  ;;  %p29_p3 = scmp.ge.s32.totalorder %s1121_s23, 2 }
   0x9   : > { %p710_p4 = scmp.ge.s32.totalorder %s917_s21, 1  ;;  %p993_p5 = por %p125_p2, %p124_p1 }
   0xa   : > { %p199_p6 = scmp.lt.s32.totalorder %s917_s21, 7  ;;  %s1123_s23 = smov (%p29_p3, %s1121_s23), 0 }
   0xb   : > { %1110 = sst [smem:[#allocation5_spill]] %s1123_s23  ;;  %s109_s27 = ssub.s32 %s913_s20, %s1123_s23 }
   0xc   : > { %p200_p7 = pnand %p710_p4, %p199_p6  ;;  %s111_s28 = sor.u32 %s110_s25, %s109_s27 }
   0xd   : > { %s114_s29 = sadd.s32 1, %s897_s16  ;;  %p112_p8 = scmp.eq.s32.totalorder %s111_s28, 0 }
   0xe   : > { %203 = sbr.rel (%p200_p7) target bundleno = 761 (0x2f9), region = 32  ;;  %s227_s5 = sand.u32 (!%p200_p7), 1, %s893_s15  }
   0xf   : > { %s1004_s30 = scalar_select %p112_p8, %s897_s16, %s114_s29  }
  0x10   : > { %s712_s6 = sshll.u32 (!%p200_p7), %s905_s18, 2  ;;  %s711_s7 = sshll.u32 (!%p200_p7), %s227_s5, 5 }
  0x11   : > { %p238_p9 = scmp.lt.s32.totalorder (!%p200_p7), %s712_s6, 7  ;;  %s714_s8 = sshll.u32 (!%p200_p7), %s901_s17, 4 }
  0x12   : > { %p244_p10 = scmp.lt.s32.totalorder (!%p200_p7), %s714_s8, 47  ;;  %p249_p11 = scmp.lt.s32.totalorder (!%p200_p7), %s901_s17, 2 }
  0x13   : > { %s1125_s6 = smov (!%p238_p9, %s712_s6), 7  ;;  %s1032_s11 = scalar_lea.vmem [#allocation4], %s711_s7 }
  0x14   : > { %s713_s9 = sshll.u32 %s1125_s6, 2  ;;  %s717_s10 = sshll.u32 %s1125_s6, 3 }
  0x15   : > { %s1013_s13 = scalar_lea.vmem %s1103_s0, %s713_s9  ;;  %s1018_s25 = scalar_lea.vmem %s1107_s4, %s717_s10 }
  0x16   : > { %s1127_s8 = smov (!%p244_p10, %s714_s8), 47  ;;  %p718_p12 = scmp.ne.s32.totalorder %s901_s17, 0 }
  0x17   : > { %s1021_s15 = scalar_select %p249_p11, %s901_s17, 2 }
  0x18   : > { %s715_s27 = sshll.u32 %s1127_s8, 2  ;;  %263 = sbr.rel (%p718_p12) target bundleno = 34 (0x22), region = 36 }
  0x19   : > { %s1026_s5 = scalar_lea.vmem %s1104_s1, %s715_s27  ;;  %s251_s9 = scalar_lea.vmem %s1105_s2, %s1021_s15 }
  0x1d   : > { %vm264_vm0 = vcmask 7168   ;;  %v919_v0 = vmov -inf   ;;  %v920_v1 = vmov 0.0  }
  0x1e   : > { %265 = vst.msk [vmem:[#allocation2] sm:$0xff] %vm264_vm0, %v919_v0  ;;  %266 = vst.msk [vmem:[#allocation2 + $0x8] sm:$0xff] %vm264_vm0, %v919_v0 }
  0x1f   : > { %267 = vst.msk [vmem:[#allocation2 + $0x10] sm:$0xff] %vm264_vm0, %v919_v0  ;;  %268 = vst.msk [vmem:[#allocation2 + $0x18] sm:$0xff] %vm264_vm0, %v919_v0 }
  0x20   : > { %269 = vst.msk [vmem:[#allocation3] sm:$0xff] %vm264_vm0, %v920_v1  ;;  %270 = vst.msk [vmem:[#allocation3 + $0x8] sm:$0xff] %vm264_vm0, %v920_v1 }
  0x21   : > { %271 = vst.msk [vmem:[#allocation3 + $0x10] sm:$0xff] %vm264_vm0, %v920_v1  ;;  %272 = vst.msk [vmem:[#allocation3 + $0x18] sm:$0xff] %vm264_vm0, %v920_v1 }
  0x22 PF: > { %v829_v2 = vld [vmem:[%s1026_s5 + $0x38] sm:$0xff]   ;;  %v830_v3 = vld [vmem:[%s1026_s5 + $0x30] sm:$0xff]   ;;  %v831_v4 = vld [vmem:[%s1026_s5 + $0x28] sm:$0xff]   ;;  %v921_v21 = vmov 0   ;;  %vm493_vm1 = vcmask 7168   ;;  %p730_p13 = scmp.ne.s32.totalorder %s901_s17, 2 }
  0x23   : > { %747 = vmatprep.subr.bf16.mxu0 %v829_v2  ;;  %v837_v5 = vld [vmem:[%s1013_s13] sm:$0xff]   ;;  %v833_v7 = vld [vmem:[%s1026_s5 + $0x18] sm:$0xff]   ;;  %v834_v8 = vld [vmem:[%s1026_s5 + $0x10] sm:$0xff]   ;;  %828 = vset.pattern.permute.xlu1 %v921_v21 }
  0x24   : > { %748 = vmatpush3.bf16.xpose.msra.mxu0 %v829_v2  ;;  %763 = vmatprep.mubr.bf16.mxu0 %v837_v5  ;;  %v832_v6 = vld [vmem:[%s1026_s5 + $0x20] sm:$0xff]   ;;  %v835_v9 = vld [vmem:[%s1026_s5 + $0x8] sm:$0xff]  }
  0x25   : > { %749 = vmatprep.subr.bf16.mxu0 %v830_v3  ;;  %v836_v10 = vld [vmem:[%s1026_s5] sm:$0xff]   ;;  %v838_v11 = vld [vmem:[%s1013_s13 + $0x8] sm:$0xff]   ;;  %827 = vset.pattern.permute.xlu0 %v921_v21 }
  0x26   : > { %v719_v12 = vld [vmem:[%s251_s9] ss:$0 sm:$0xff]  ;;  %v415_v22 = vld [vmem:[#allocation2 + $0x10] sm:$0xff]  ;;  %v416_v27 = vld [vmem:[#allocation2 + $0x18] sm:$0xff] }
  0x27   : > { %v413_v24 = vld [vmem:[#allocation2] sm:$0xff]  ;;  %v414_v31 = vld [vmem:[#allocation2 + $0x8] sm:$0xff] }
  0x28   : > { %v441_v59 = vld [vmem:[#allocation3] sm:$0xff]  ;;  %v443_v0 = vld [vmem:[#allocation3 + $0x10] sm:$0xff]  ;;  %v442_v1 = vld [vmem:[#allocation3 + $0x8] sm:$0xff] }
  0x2c   : > { %750 = vmatpush3.bf16.xpose.msra.mxu0 %v830_v3 }
  0x2d   : > { %751 = vmatprep.subr.bf16.mxu0 %v831_v4 }
  0x34   : > { %752 = vmatpush3.bf16.xpose.msra.mxu0 %v831_v4 }
  0x35   : > { %753 = vmatprep.subr.bf16.mxu0 %v832_v6 }
  0x3c   : > { %754 = vmatpush3.bf16.xpose.msra.mxu0 %v832_v6 }
  0x3d   : > { %755 = vmatprep.subr.bf16.mxu0 %v833_v7 }
  0x44   : > { %756 = vmatpush3.bf16.xpose.msra.mxu0 %v833_v7 }
  0x45   : > { %757 = vmatprep.subr.bf16.mxu0 %v834_v8 }
  0x4c   : > { %758 = vmatpush3.bf16.xpose.msra.mxu0 %v834_v8  ;;  %v444_v8 = vld [vmem:[#allocation3 + $0x18] sm:$0xff] }
  0x4d   : > { %759 = vmatprep.subr.bf16.mxu0 %v835_v9 }
  0x54   : > { %760 = vmatpush3.bf16.xpose.msra.mxu0 %v835_v9 }
  0x55   : > { %761 = vmatprep.subr.bf16.mxu0 %v836_v10 }
  0x5c   : > { %762 = vmatpush3.bf16.xpose.msra.mxu0 %v836_v10 }
  0x63   : > { %764 = vmatmul.mubr.bf16.vlgmr.msra.gmra.mxu0 %v838_v11 }
 0x123   : > { %v765_v13 = vpop.f32.mrf.mxu0 }
 0x124   : > { %v403_v14 = vadd.f32 %v765_v13, %v719_v12 }
 0x125   : > { %v394_v15 = vpop.f32.mrf.mxu0 }
 0x126   : > { %411 = vst [vmem:[%s1032_s11 + $0x10] sm:$0xff] %v403_v14  ;;  %v395_v16 = vadd.f32 %v719_v12, %v394_v15  ;;  %421 = vmax.xlane.f32.xlu1 %v403_v14 }
 0x127   : > { %v766_v17 = vpop.f32.mrf.mxu0 }
 0x128   : > { %409 = vst [vmem:[%s1032_s11] sm:$0xff] %v395_v16  ;;  %v406_v18 = vadd.f32 %v766_v17, %v719_v12  ;;  %417 = vmax.xlane.f32.xlu0 %v395_v16 }
 0x129   : > { %v397_v19 = vpop.f32.mrf.mxu0 }
 0x12a   : > { %412 = vst [vmem:[%s1032_s11 + $0x18] sm:$0xff] %v406_v18  ;;  %v398_v20 = vadd.f32 %v719_v12, %v397_v19  ;;  %423 = vmax.xlane.f32.xlu1 %v406_v18 }
 0x12c   : > { %410 = vst [vmem:[%s1032_s11 + $0x8] sm:$0xff] %v398_v20  ;;  %419 = vmax.xlane.f32.xlu0 %v398_v20 }
 0x1af   : > { %v422_v23 = vpop.xlane.xlu1 %421 }
 0x1b0   : > { %v427_v25 = vmax.f32 %v415_v22, %v422_v23 }
 0x1b1   : > { %v418_v26 = vpop.xlane.xlu0 %417 }
 0x1b2   : > { %v431_v28 = vsub.f32 %v415_v22, %v427_v25  ;;  %500 = vst.msk [vmem:[#allocation2 + $0x10] sm:$0xff] %vm493_vm1, %v427_v25  ;;  %v425_v29 = vmax.f32 %v413_v24, %v418_v26  ;;  %461 = vperm.xlu1 %828, %v427_v25  }
 0x1b3   : > { %v424_v30 = vpop.xlane.xlu1 %423 }
 0x1b4   : > { %v429_v32 = vsub.f32 %v413_v24, %v425_v29  ;;  %498 = vst.msk [vmem:[#allocation2] sm:$0xff] %vm493_vm1, %v425_v29  ;;  %v428_v33 = vmax.f32 %v416_v27, %v424_v30  ;;  %451 = vperm.xlu0 %827, %v425_v29   ;;  %v437_v55 = vmul.f32 1.442695, %v431_v28 }
 0x1b5   : > { %v420_v34 = vpop.xlane.xlu0 %419 }
 0x1b6   : > { %v432_v35 = vsub.f32 %v416_v27, %v428_v33  ;;  %501 = vst.msk [vmem:[#allocation2 + $0x18] sm:$0xff] %vm493_vm1, %v428_v33  ;;  %v426_v36 = vmax.f32 %v414_v31, %v420_v34  ;;  %v433_v54 = vmul.f32 1.442695, %v429_v32 }
 0x1b8   : > { %v430_v37 = vsub.f32 %v414_v31, %v426_v36  ;;  %499 = vst.msk [vmem:[#allocation2 + $0x8] sm:$0xff] %vm493_vm1, %v426_v36  ;;  %456 = vperm.xlu1 %828, %v426_v36   ;;  %v439_v57 = vmul.f32 1.442695, %v432_v35 }
 0x1ba   : > { %v435_v56 = vmul.f32 1.442695, %v430_v37 }
 0x1bc   : > { %466 = vperm.xlu1 %828, %v428_v33  }
 0x22d   : > { %v462_v38 = vpop.permute.xlu1 %461 }
 0x22e   : > { %v471_v39 = vsub.f32 %v403_v14, %v462_v38 }
 0x22f   : > { %v452_v40 = vpop.permute.xlu0 %451 }
 0x230   : > { %v469_v41 = vsub.f32 %v395_v16, %v452_v40  ;;  %v477_v43 = vmul.f32 1.442695, %v471_v39 }
 0x232   : > { %v473_v42 = vmul.f32 1.442695, %v469_v41 }
 0x233   : > { %v457_v44 = vpop.permute.xlu1 %456 }
 0x234   : > { %839 = vpow2.f32 %v473_v42  ;;  %v470_v45 = vsub.f32 %v398_v20, %v457_v44 }
 0x235   : > { %841 = vpow2.f32 %v477_v43 }
 0x236   : > { %v475_v46 = vmul.f32 1.442695, %v470_v45 }
 0x237   : > { %v467_v47 = vpop.permute.xlu1 %466 }
 0x238   : > { %843 = vpow2.f32 %v475_v46  ;;  %v472_v48 = vsub.f32 %v406_v18, %v467_v47 }
 0x23a   : > { %v479_v49 = vmul.f32 1.442695, %v472_v48 }
 0x23c   : > { %845 = vpow2.f32 %v479_v49 }
 0x23d   : > { %847 = vpow2.f32 %v433_v54 }
 0x23e   : > { %849 = vpow2.f32 %v437_v55 }
 0x23f   : > { %851 = vpow2.f32 %v435_v56 }
 0x240   : > { %853 = vpow2.f32 %v439_v57 }
 0x241   : > { %v840_v50 = vpop.eup %839 }
 0x242   : > { %481 = vadd.xlane.f32.xlu1 %v840_v50  ;;  %v842_v51 = vpop.eup %841 }
 0x245   : > { %v844_v52 = vpop.eup %843 }
 0x246   : > { %483 = vadd.xlane.f32.xlu0 %v844_v52  ;;  %485 = vadd.xlane.f32.xlu1 %v842_v51 }
 0x249   : > { %v846_v53 = vpop.eup %845 }
 0x24a   : > { %487 = vadd.xlane.f32.xlu1 %v846_v53  ;;  %v848_v58 = vpop.eup %847 }
 0x24b   : > { %v850_v60 = vpop.eup %849  ;;  %v445_v61 = vmul.f32 %v848_v58, %v441_v59 }
 0x24c   : > { %v852_v62 = vpop.eup %851  ;;  %v447_v3 = vmul.f32 %v850_v60, %v443_v0 }
 0x24d   : > { %v446_v4 = vmul.f32 %v852_v62, %v442_v1  ;;  %v854_v5 = vpop.eup %853 }
 0x24e   : > { %v448_v11 = vmul.f32 %v854_v5, %v444_v8 }
 0x2cb   : > { %v482_v63 = vpop.xlane.xlu1 %481 }
 0x2cc   : > { %v489_v2 = vadd.f32 %v482_v63, %v445_v61 }
 0x2ce   : > { %494 = vst.msk [vmem:[#allocation3] sm:$0xff] %vm493_vm1, %v489_v2 }
 0x2cf   : > { %v486_v6 = vpop.xlane.xlu1 %485  ;;  %v484_v7 = vpop.xlane.xlu0 %483 }
 0x2d0   : > { %v491_v9 = vadd.f32 %v486_v6, %v447_v3  ;;  %v490_v10 = vadd.f32 %v484_v7, %v446_v4 }
 0x2d2   : > { %496 = vst.msk [vmem:[#allocation3 + $0x10] sm:$0xff] %vm493_vm1, %v491_v9  ;;  %495 = vst.msk [vmem:[#allocation3 + $0x8] sm:$0xff] %vm493_vm1, %v490_v10  ;;  %505 = sbr.rel (%p730_p13) target bundleno = 753 (0x2f1), region = 40 }
 0x2d3   : > { %v488_v12 = vpop.xlane.xlu1 %487 }
 0x2d4   : > { %v492_v13 = vadd.f32 %v488_v12, %v448_v11 }
 0x2d6   : > { %497 = vst.msk [vmem:[#allocation3 + $0x18] sm:$0xff] %vm493_vm1, %v492_v13 }
 0x2d7   : > { %v510_v14 = vld [vmem:[#allocation3] sm:$0xff]  ;;  %v507_v22 = vld [vmem:[#allocation2 + $0x8] sm:$0xff]  ;;  %v508_v25 = vld [vmem:[#allocation2 + $0x10] sm:$0xff] }
 0x2d8   : > { %855 = vlog2.f32 %v510_v14  ;;  %v506_v19 = vld [vmem:[#allocation2] sm:$0xff]  ;;  %v509_v29 = vld [vmem:[#allocation2 + $0x18] sm:$0xff] }
 0x2d9   : > { %v511_v15 = vld [vmem:[#allocation3 + $0x8] sm:$0xff]  ;;  %v512_v16 = vld [vmem:[#allocation3 + $0x10] sm:$0xff] }
 0x2da   : > { %857 = vlog2.f32 %v511_v15 }
 0x2db   : > { %859 = vlog2.f32 %v512_v16 }
 0x2dd   : > { %v513_v17 = vld [vmem:[#allocation3 + $0x18] sm:$0xff] }
 0x2de   : > { %861 = vlog2.f32 %v513_v17 }
 0x2e5   : > { %v856_v18 = vpop.eup %855 }
 0x2e6   : > { %v515_v21 = vmul.f32 0.6931472, %v856_v18 }
 0x2e7   : > { %v858_v20 = vpop.eup %857 }
 0x2e8   : > { %v860_v23 = vpop.eup %859  ;;  %v517_v24 = vmul.f32 0.6931472, %v858_v20  ;;  %v522_v27 = vadd.f32 %v515_v21, %v506_v19 }
 0x2e9   : > { %v519_v28 = vmul.f32 0.6931472, %v860_v23 }
 0x2ea   : > { %v523_v30 = vadd.f32 %v517_v24, %v507_v22  ;;  %526 = vst.msk [vmem:[%s1018_s25] sm:$0xff] %vm493_vm1, %v522_v27 }
 0x2eb   : > { %v862_v26 = vpop.eup %861  ;;  %v524_v32 = vadd.f32 %v519_v28, %v508_v25 }
 0x2ec   : > { %v521_v31 = vmul.f32 0.6931472, %v862_v26  ;;  %527 = vst.msk [vmem:[%s1018_s25 + $0x8] sm:$0xff] %vm493_vm1, %v523_v30 }
 0x2ed   : > { %528 = vst.msk [vmem:[%s1018_s25 + $0x10] sm:$0xff] %vm493_vm1, %v524_v32 }
 0x2ee   : > { %v525_v33 = vadd.f32 %v521_v31, %v509_v29 }
 0x2f0   : > { %529 = vst.msk [vmem:[%s1018_s25 + $0x18] sm:$0xff] %vm493_vm1, %v525_v33 }
 0x2f1 PF: > { %541 = sbr.rel (!%p993_p5) target bundleno = 761 (0x2f9), region = 44  ;;  %v581_v34 = vld [vmem:[%s1032_s11] sm:$0xff] (%p993_p5)  ;;  %v583_v35 = vld [vmem:[%s1032_s11 + $0x8] sm:$0xff] (%p993_p5)  ;;  %v585_v36 = vld [vmem:[%s1032_s11 + $0x10] sm:$0xff] (%p993_p5) }
 0x2f2   : > { %s767_s8 = smul.u32 (%p993_p5), 12, %s905_s18  ;;  %v587_v37 = vld [vmem:[%s1032_s11 + $0x18] sm:$0xff] (%p993_p5) }
 0x2f4   : > { %s544_s10 = sadd.s32 (%p993_p5), %s901_s17, %s767_s8 }
 0x2f5   : > { %s734_s12 = sshll.u32 (%p993_p5), %s544_s10, 3 }
 0x2f6   : > { %s546_s24 = scalar_lea.vmem %s1106_s3, %s734_s12 }
 0x2f7   : > { %582 = vst [vmem:[%s546_s24] sm:$0xff] %v581_v34  ;;  %584 = vst [vmem:[%s546_s24 + $0x18] sm:$0xff] %v583_v35 }
 0x2f8   : > { %586 = vst [vmem:[%s546_s24 + $0x30] sm:$0xff] %v585_v36  ;;  %588 = vst [vmem:[%s546_s24 + $0x48] sm:$0xff] %v587_v37 }
 0x2f9 PF: > { %s15_s21 = sadd.s32 1, %s917_s21   ;;  %s1111_s26 = sld [smem:[#allocation5_spill]] }
 0x2fa   : > { %p12_p0 = scmp.ge.s32.totalorder %s15_s21, 8   ;;  %s1112_s15 = smov %s897_s16 }
 0x2fb   : > { %s1113_s16 = smov %s1004_s30  ;;  %s1114_s17 = smov %s909_s19 }
 0x2fc   : > { %s1115_s18 = smov %s913_s20  ;;  %s1116_s19 = smov %s1119_s22 }
 0x2fd   :  { %14 = sbr.rel (!%p12_p0) target bundleno = 4 (0x4), region = 126 }
 0x2ff   : > { %s1117_s20 = smov %s1111_s26 }

</bundles_post_ra>
